<compile_context>
chip_gen: v5e
topology: v5e:2x2
jax: 0.10.0
libtpu: 0.0.40
codegen_flags: <defaults>
</compile_context>

<pallas_src>
import functools

import jax
import jax.numpy as jnp
from jax.experimental import pallas as pl
from jax.experimental.pallas import tpu as pltpu


def _smooth_linear_kernel(x_ref, nsum_ref, w_ref, b_ref, o_ref, *, scale):
    # torch reference (as written): x + randn_like(x) * sigma ** 2, averaged.
    # scale == sigma**2 / num_samples folds the per-sample scaling and the
    # final mean into a single VPU multiply on the pre-summed noise.
    x_bar = x_ref[...] + nsum_ref[...] * jnp.float32(scale)

    # Single lane-dense bf16 MXU matmul with f32 accumulation; bias added once.
    logits = jnp.dot(x_bar.astype(jnp.bfloat16), w_ref[...],
                     preferred_element_type=jnp.float32)
    o_ref[...] = logits + b_ref[...]


def smooth_forward(x_nchw, w, b, *, sigma, num_samples, seed):
    """x_nchw: [B, C, H, W] f32; w: [D, num_classes]; b: [num_classes]."""
    B, C, H, W_ = x_nchw.shape
    D = C * H * W_
    num_classes = w.shape[1]

    # Batch tile: large (up to 256 rows) for realistic batches, 8-row minimum
    # (sublane aligned) for tiny ones so padding stays negligible.
    TB = int(min(256, max(8, pl.next_power_of_2(B))))
    Bp = pl.cdiv(B, TB) * TB                   # padded batch
    Np = pl.cdiv(num_classes, 128) * 128       # lane-dense class dim

    # Wrapper-side glue: flatten NCHW (same order as torch.flatten) + padding.
    x2 = jnp.pad(x_nchw.reshape(B, D).astype(jnp.float32),
                 ((0, Bp - B), (0, 0)))
    w_p = jnp.pad(w.astype(jnp.float32),
                  ((0, 0), (0, Np - num_classes))).astype(jnp.bfloat16)
    b_p = jnp.pad(b.astype(jnp.float32).reshape(1, num_classes),
                  ((0, 0), (0, Np - num_classes)))

    # Monte-Carlo standard-normal draws, PRE-SUMMED outside the kernel (the
    # affine-classifier fold makes only the sum matter).  The kernel therefore
    # streams a single (Bp, D) slab instead of (num_samples, Bp, D).
    noise_sum = jax.random.normal(jax.random.PRNGKey(seed),
                                  (num_samples, B, D),
                                  dtype=jnp.float32).sum(axis=0)
    noise_sum = jnp.pad(noise_sum, ((0, Bp - B), (0, 0)))

    kernel = functools.partial(_smooth_linear_kernel,
                               scale=(sigma ** 2) / num_samples)

    out_p = pl.pallas_call(
        kernel,
        out_shape=jax.ShapeDtypeStruct((Bp, Np), jnp.float32),
        grid=(Bp // TB,),
        in_specs=[
            pl.BlockSpec((TB, D), lambda i: (i, 0)),   # x tile
            pl.BlockSpec((TB, D), lambda i: (i, 0)),   # pre-summed noise tile
            pl.BlockSpec((D, Np), lambda i: (0, 0)),   # W (constant block -> DMA'd once)
            pl.BlockSpec((1, Np), lambda i: (0, 0)),   # bias (constant block)
        ],
        out_specs=pl.BlockSpec((TB, Np), lambda i: (i, 0)),
        compiler_params=pltpu.CompilerParams(
            dimension_semantics=("parallel",)),   # batch tiles are independent
    )(x2, noise_sum, w_p, b_p)

    return out_p[:B, :num_classes]


if __name__ == "__main__":
    # Small, deterministic setup.
    B, C, H, W = 2, 4, 16, 16
    num_classes = 10
    num_samples = 8
    sigma = 0.25
    seed = 1234
    D = C * H * W

    key = jax.random.PRNGKey(0)
    kx, kw, kb = jax.random.split(key, 3)
    x = jax.random.normal(kx, (B, C, H, W), dtype=jnp.float32)
    w = jax.random.normal(kw, (D, num_classes), dtype=jnp.float32) * 0.02
    b = jax.random.normal(kb, (num_classes,), dtype=jnp.float32) * 0.01

    out = smooth_forward(x, w, b, sigma=sigma, num_samples=num_samples, seed=seed)
    out = jax.block_until_ready(out)

    # Pure-JAX reference mirroring the PyTorch per-sample loop, using the SAME
    # noise draws the wrapper generated (so the linearity fold is checked
    # bit-for-bit against the per-sample accumulation).
    noise_ref = jax.random.normal(jax.random.PRNGKey(seed),
                                  (num_samples, B, D), dtype=jnp.float32)
    x2 = x.reshape(B, D)
    ref = jnp.zeros((B, num_classes), jnp.float32)
    for i in range(num_samples):
        ref = ref + (x2 + noise_ref[i] * (sigma ** 2)) @ w + b
    ref = ref / num_samples

    assert out.shape == (B, num_classes)
    assert out.dtype == jnp.float32
    assert bool(jnp.all(jnp.isfinite(out)))
    assert bool(jnp.allclose(out, ref, rtol=3e-2, atol=3e-2))
    print("KERNEL_OK")
</pallas_src>

<mosaic_0001>
module attributes {stable_mosaic.version = 11 : i64} {
  func.func @_smooth_linear_kernel(%arg0: i32, %arg1: memref<8x1024xf32, #tpu.memory_space<vmem>>, %arg2: memref<8x1024xf32, #tpu.memory_space<vmem>>, %arg3: memref<1024x128xbf16, #tpu.memory_space<vmem>>, %arg4: memref<1x128xf32, #tpu.memory_space<vmem>>, %arg5: memref<8x128xf32, #tpu.memory_space<vmem>>) attributes {dimension_semantics = [#tpu.dimension_semantics<parallel>], iteration_bounds = array<i64: 1>, scalar_prefetch = 0 : i64, scratch_operands = 0 : i64, tpu.core_type = #tpu.core_type<tc>, window_params = [{transform_indices = @transform_0, window_bounds = array<i64: 8, 1024>}, {transform_indices = @transform_1, window_bounds = array<i64: 8, 1024>}, {pipeline_mode = #tpu.pipeline_mode<synchronous>, transform_indices = @transform_2, window_bounds = array<i64: 1024, 128>}, {pipeline_mode = #tpu.pipeline_mode<synchronous>, transform_indices = @transform_3, window_bounds = array<i64: 1, 128>}, {transform_indices = @transform_4, window_bounds = array<i64: 8, 128>}]} {
    %c0 = arith.constant 0 : index
    %c0_0 = arith.constant 0 : index
    %0 = vector.load %arg1[%c0, %c0_0] : memref<8x1024xf32, #tpu.memory_space<vmem>>, vector<8x1024xf32>
    %c0_1 = arith.constant 0 : index
    %c0_2 = arith.constant 0 : index
    %1 = vector.load %arg2[%c0_1, %c0_2] : memref<8x1024xf32, #tpu.memory_space<vmem>>, vector<8x1024xf32>
    %cst = arith.constant 7.812500e-03 : f32
    %2 = vector.broadcast %cst : f32 to vector<8x1024xf32>
    %3 = arith.mulf %1, %2 : vector<8x1024xf32>
    %4 = arith.addf %0, %3 : vector<8x1024xf32>
    %5 = arith.truncf %4 : vector<8x1024xf32> to vector<8x1024xbf16>
    %c0_3 = arith.constant 0 : index
    %c0_4 = arith.constant 0 : index
    %6 = vector.load %arg3[%c0_3, %c0_4] : memref<1024x128xbf16, #tpu.memory_space<vmem>>, vector<1024x128xbf16>
    %cst_5 = arith.constant dense<0.000000e+00> : vector<8x128xf32>
    %7 = tpu.matmul %5, %6, %cst_5 {dimension_numbers = #tpu.dot_dimension_numbers<[1], [0], [0], [1], [0, 0, 1, 1], [], []>} : vector<8x1024xbf16>, vector<1024x128xbf16>, vector<8x128xf32> -> vector<8x128xf32>
    %c0_6 = arith.constant 0 : index
    %c0_7 = arith.constant 0 : index
    %8 = vector.load %arg4[%c0_6, %c0_7] : memref<1x128xf32, #tpu.memory_space<vmem>>, vector<1x128xf32>
    %9 = vector.broadcast %8 : vector<1x128xf32> to vector<8x128xf32>
    %10 = arith.addf %7, %9 : vector<8x128xf32>
    %c0_8 = arith.constant 0 : index
    %c0_9 = arith.constant 0 : index
    %11 = vector.load %arg5[%c0_8, %c0_9] : memref<8x128xf32, #tpu.memory_space<vmem>>, vector<8x128xf32>
    tpu.vector_store %arg5[%c0_8, %c0_9], %10 {strides = array<i32>} : memref<8x128xf32, #tpu.memory_space<vmem>>, vector<8x128xf32>,
    return
  }
  func.func @transform_0(%arg0: i32) -> (i32, i32) {
    %c0_i32 = arith.constant 0 : i32
    %c0_i32_0 = arith.constant 0 : i32
    return %arg0, %c0_i32 : i32, i32
  }
  func.func @transform_1(%arg0: i32) -> (i32, i32) {
    %c0_i32 = arith.constant 0 : i32
    %c0_i32_0 = arith.constant 0 : i32
    return %arg0, %c0_i32 : i32, i32
  }
  func.func @transform_2(%arg0: i32) -> (i32, i32) {
    %c0_i32 = arith.constant 0 : i32
    %c0_i32_0 = arith.constant 0 : i32
    %c0_i32_1 = arith.constant 0 : i32
    return %c0_i32, %c0_i32_0 : i32, i32
  }
  func.func @transform_3(%arg0: i32) -> (i32, i32) {
    %c0_i32 = arith.constant 0 : i32
    %c0_i32_0 = arith.constant 0 : i32
    %c0_i32_1 = arith.constant 0 : i32
    return %c0_i32, %c0_i32_0 : i32, i32
  }
  func.func @transform_4(%arg0: i32) -> (i32, i32) {
    %c0_i32 = arith.constant 0 : i32
    %c0_i32_0 = arith.constant 0 : i32
    return %arg0, %c0_i32 : i32, i32
  }
}

</mosaic_0001>

<bundles_post_ra>
// kernel: tpu_custom_call.1
= control target key start
LH: loop header
LB: loop body
LE: loop exit
PB: predicated region body
PF: predicated region fallthrough
CT: control target
= control target key end

     0   :  { %9 = vsyncpa [#allocation3], 0  ;;  %s1215_s0 = inlined_call_operand.hbm [shape: f32[8,1024], index: 0, kind: input, shape index: {}]   ;;  %s1216_s1 = inlined_call_operand.hbm [shape: f32[8,1024], index: 1, kind: input, shape index: {}]   ;;  %s1217_s2 = inlined_call_operand.hbm [shape: bf16[1024,128], index: 2, kind: input, shape index: {}]   ;;  %s1218_s3 = inlined_call_operand.vmem [shape: f32[1,128], index: 3, kind: input, shape index: {}]   ;;  %s1219_s4 = inlined_call_operand.hbm [shape: f32[8,128], index: 4, kind: output, shape index: {}]  }
   0x1   :  { %10 = vsyncpa [#allocation6], 0  ;;  %s28_s17 = sshll.u32 %s1216_s1, 4  ;;  %s29_s17 = int_to_ptr.hbm [resolvable:$true] %s28_s17 }
   0x2   :  { %11 = vsyncpa [#allocation4], 0  ;;  %s1169_s18 = smov [#allocation5]   ;;  %s17_s22 = sshll.u32 %s1215_s0, 4  ;;  %s18_s22 = int_to_ptr.hbm [resolvable:$true] %s17_s22 }
   0x3   :  { %s30_s19 = sshll.u32 %s1169_s18, 4  ;;  %s1170_s23 = smov [#allocation2]   ;;  %s31_s19 = int_to_ptr.vmem [resolvable:$true] %s30_s19 }
   0x4   :  { %33 = dma.hbm_to_vmem [thread:$0]  %s29_s17, 1024, %s31_s19, [#allocation6]  }
   0x5   :  { %s19_s24 = sshll.u32 %s1170_s23, 4  ;;  %s38_s27 = sshll.u32 %s1217_s2, 4  ;;  %s20_s24 = int_to_ptr.vmem [resolvable:$true] %s19_s24  ;;  %s39_s27 = int_to_ptr.hbm [resolvable:$true] %s38_s27 }
   0x6   :  { %22 = dma.hbm_to_vmem [thread:$0]  %s18_s22, 1024, %s20_s24, [#allocation3]  }
   0x7   :  { %s1171_s1 = smov [#allocation7]   ;;  %s1172_s29 = smov 64  }
   0x8   :  { %s40_s28 = sshll.u32 %s1171_s1, 4  ;;  %s1173_s30 = smov 4   ;;  %s41_s28 = int_to_ptr.vmem [resolvable:$true] %s40_s28 }
   0x9   :  { %46 = dma.hbm_to_vmem [thread:$0]  %s39_s27, 8192, %s41_s28, [#allocation6], %s1172_s29, %s1172_s29, %s1173_s30  }
   0xa   :  { %1163 = dma.done.wait [#allocation3], 1024  }
   0xb   :  { %1164 = vsyncadd [#allocation3], 4294966272 }
   0xc   :  { %1165 = dma.done.wait [#allocation6], 9216  }
   0xd   :  { %1166 = vsyncadd [#allocation6], 4294958080  ;;  %v1003_v0 = vld [vmem:[#allocation7 + $0x38] sm:$0xff]  ;;  %v1002_v4 = vld [vmem:[#allocation7 + $0x30] sm:$0xff]  ;;  %s1174_s5 = smov [#allocation8]   ;;  %s729_s9 = sshll.u32 %s1219_s4, 4  ;;  %s730_s9 = int_to_ptr.hbm [resolvable:$true] %s729_s9 }
   0xe   :  { %v1011_v1 = vld [vmem:[#allocation7 + $0x78] sm:$0xff]  ;;  %617 = vmatpush.bf16.msra.mxu0 %v1003_v0  ;;  %v1010_v5 = vld [vmem:[#allocation7 + $0x70] sm:$0xff]  ;;  %v1001_v8 = vld [vmem:[#allocation7 + $0x28] sm:$0xff]  ;;  %s727_s6 = sshll.u32 %s1174_s5, 4  ;;  %s728_s6 = int_to_ptr.vmem [resolvable:$true] %s727_s6 }
   0xf   :  { %v1019_v2 = vld [vmem:[#allocation7 + $0xb8] sm:$0xff]  ;;  %630 = vmatpush.bf16.msra.mxu1 %v1011_v1  ;;  %v1018_v6 = vld [vmem:[#allocation7 + $0xb0] sm:$0xff]  ;;  %v1009_v9 = vld [vmem:[#allocation7 + $0x68] sm:$0xff] }
  0x10   :  { %v1027_v3 = vld [vmem:[#allocation7 + $0xf8] sm:$0xff]  ;;  %643 = vmatpush.bf16.msra.mxu2 %v1019_v2  ;;  %v1026_v7 = vld [vmem:[#allocation7 + $0xf0] sm:$0xff]  ;;  %v1017_v10 = vld [vmem:[#allocation7 + $0xa8] sm:$0xff] }
  0x11   :  { %656 = vmatpush.bf16.msra.mxu3 %v1027_v3  ;;  %v1025_v11 = vld [vmem:[#allocation7 + $0xe8] sm:$0xff]  ;;  %v1000_v12 = vld [vmem:[#allocation7 + $0x20] sm:$0xff]  ;;  %v999_v16 = vld [vmem:[#allocation7 + $0x18] sm:$0xff] }
  0x12   :  { %618 = vmatpush.bf16.msra.mxu0 %v1002_v4  ;;  %v1008_v13 = vld [vmem:[#allocation7 + $0x60] sm:$0xff]  ;;  %v1007_v17 = vld [vmem:[#allocation7 + $0x58] sm:$0xff]  ;;  %v998_v20 = vld [vmem:[#allocation7 + $0x10] sm:$0xff] }
  0x13   :  { %631 = vmatpush.bf16.msra.mxu1 %v1010_v5  ;;  %v1016_v14 = vld [vmem:[#allocation7 + $0xa0] sm:$0xff]  ;;  %v1015_v18 = vld [vmem:[#allocation7 + $0x98] sm:$0xff]  ;;  %v1006_v21 = vld [vmem:[#allocation7 + $0x50] sm:$0xff] }
  0x14   :  { %644 = vmatpush.bf16.msra.mxu2 %v1018_v6  ;;  %v1024_v15 = vld [vmem:[#allocation7 + $0xe0] sm:$0xff]  ;;  %v1023_v19 = vld [vmem:[#allocation7 + $0xd8] sm:$0xff]  ;;  %v1014_v22 = vld [vmem:[#allocation7 + $0x90] sm:$0xff] }
  0x15   :  { %657 = vmatpush.bf16.msra.mxu3 %v1026_v7  ;;  %v1022_v23 = vld [vmem:[#allocation7 + $0xd0] sm:$0xff]  ;;  %v72_v25 = vld [vmem:[#allocation5 + $0x18] sm:$0xff]  ;;  %v69_v26 = vld [vmem:[#allocation5] sm:$0xff] }
  0x16   :  { %619 = vmatpush.bf16.msra.mxu0 %v1001_v8  ;;  %v71_v24 = vld [vmem:[#allocation5 + $0x10] sm:$0xff]  ;;  %v70_v27 = vld [vmem:[#allocation5 + $0x8] sm:$0xff]  ;;  %v80_v32 = vmul.f32 0.0078125, %v72_v25  ;;  %v64_v35 = vld [vmem:[#allocation2 + $0x18] sm:$0xff]  ;;  %v77_v36 = vmul.f32 0.0078125, %v69_v26 }
  0x17   :  { %632 = vmatpush.bf16.msra.mxu1 %v1009_v9  ;;  %v997_v28 = vld [vmem:[#allocation7 + $0x8] sm:$0xff]  ;;  %v79_v31 = vmul.f32 0.0078125, %v71_v24  ;;  %v63_v34 = vld [vmem:[#allocation2 + $0x10] sm:$0xff]  ;;  %v78_v37 = vmul.f32 0.0078125, %v70_v27  ;;  %v61_v38 = vld [vmem:[#allocation2] sm:$0xff] }
  0x18   :  { %645 = vmatpush.bf16.msra.mxu2 %v1017_v10  ;;  %v1005_v29 = vld [vmem:[#allocation7 + $0x48] sm:$0xff]  ;;  %v996_v40 = vld [vmem:[#allocation7] sm:$0xff]  ;;  %v88_v43 = vadd.f32 %v80_v32, %v64_v35  ;;  %v85_v46 = vadd.f32 %v77_v36, %v61_v38  ;;  %v1035_v48 = vld [vmem:[#allocation7 + $0x138] sm:$0xff] }
  0x19   :  { %658 = vmatpush.bf16.msra.mxu3 %v1025_v11  ;;  %v1013_v30 = vld [vmem:[#allocation7 + $0x88] sm:$0xff]  ;;  %v1004_v41 = vld [vmem:[#allocation7 + $0x40] sm:$0xff]  ;;  %v87_v42 = vadd.f32 %v79_v31, %v63_v34  ;;  %v1043_v49 = vld [vmem:[#allocation7 + $0x178] sm:$0xff] }
  0x1a   :  { %620 = vmatpush.bf16.msra.mxu0 %v1000_v12  ;;  %v1021_v33 = vld [vmem:[#allocation7 + $0xc8] sm:$0xff]  ;;  %v1012_v44 = vld [vmem:[#allocation7 + $0x80] sm:$0xff]  ;;  %v1051_v50 = vld [vmem:[#allocation7 + $0x1b8] sm:$0xff]  ;;  %v96_v53 = vpack.c.bf16 %v88_v43, %v88_v43  ;;  %v93_v54 = vpack.c.bf16 %v85_v46, %v85_v46 }
  0x1b   :  { %633 = vmatpush.bf16.msra.mxu1 %v1008_v13  ;;  %v62_v39 = vld [vmem:[#allocation2 + $0x8] sm:$0xff]  ;;  %v1020_v45 = vld [vmem:[#allocation7 + $0xc0] sm:$0xff]  ;;  %v1059_v51 = vld [vmem:[#allocation7 + $0x1f8] sm:$0xff]  ;;  %v95_v52 = vpack.c.bf16 %v87_v42, %v87_v42 }
  0x1c   :  { %646 = vmatpush.bf16.msra.mxu2 %v1016_v14  ;;  %v86_v47 = vadd.f32 %v78_v37, %v62_v39  ;;  %v1034_v56 = vld [vmem:[#allocation7 + $0x130] sm:$0xff]  ;;  %v1033_v60 = vld [vmem:[#allocation7 + $0x128] sm:$0xff]  ;;  %v1032_v0 = vld [vmem:[#allocation7 + $0x120] sm:$0xff] }
  0x1d   :  { %659 = vmatpush.bf16.msra.mxu3 %v1024_v15  ;;  %v1042_v57 = vld [vmem:[#allocation7 + $0x170] sm:$0xff]  ;;  %v1041_v61 = vld [vmem:[#allocation7 + $0x168] sm:$0xff]  ;;  %v1040_v1 = vld [vmem:[#allocation7 + $0x160] sm:$0xff] }
  0x1e   :  { %621 = vmatpush.bf16.msra.mxu0 %v999_v16  ;;  %v94_v55 = vpack.c.bf16 %v86_v47, %v86_v47  ;;  %v1050_v58 = vld [vmem:[#allocation7 + $0x1b0] sm:$0xff]  ;;  %v1049_v62 = vld [vmem:[#allocation7 + $0x1a8] sm:$0xff]  ;;  %v1048_v2 = vld [vmem:[#allocation7 + $0x1a0] sm:$0xff] }
  0x1f   :  { %634 = vmatpush.bf16.msra.mxu1 %v1007_v17  ;;  %v1058_v59 = vld [vmem:[#allocation7 + $0x1f0] sm:$0xff]  ;;  %v1057_v63 = vld [vmem:[#allocation7 + $0x1e8] sm:$0xff]  ;;  %v1056_v3 = vld [vmem:[#allocation7 + $0x1e0] sm:$0xff] }
  0x20   :  { %647 = vmatpush.bf16.msra.mxu2 %v1015_v18  ;;  %v1031_v4 = vld [vmem:[#allocation7 + $0x118] sm:$0xff]  ;;  %v1030_v8 = vld [vmem:[#allocation7 + $0x110] sm:$0xff]  ;;  %v73_v11 = vld [vmem:[#allocation5 + $0x20] sm:$0xff] }
  0x21   :  { %660 = vmatpush.bf16.msra.mxu3 %v1023_v19  ;;  %v1039_v5 = vld [vmem:[#allocation7 + $0x158] sm:$0xff]  ;;  %v1038_v9 = vld [vmem:[#allocation7 + $0x150] sm:$0xff]  ;;  %v74_v12 = vld [vmem:[#allocation5 + $0x28] sm:$0xff]  ;;  %v81_v18 = vmul.f32 0.0078125, %v73_v11 }
  0x22   :  { %622 = vmatpush.bf16.msra.mxu0 %v998_v20  ;;  %v1047_v6 = vld [vmem:[#allocation7 + $0x198] sm:$0xff]  ;;  %v1046_v10 = vld [vmem:[#allocation7 + $0x190] sm:$0xff]  ;;  %v1029_v16 = vld [vmem:[#allocation7 + $0x108] sm:$0xff]  ;;  %v82_v19 = vmul.f32 0.0078125, %v74_v12 }
  0x23   :  { %635 = vmatpush.bf16.msra.mxu1 %v1006_v21  ;;  %v1055_v7 = vld [vmem:[#allocation7 + $0x1d8] sm:$0xff]  ;;  %v1054_v13 = vld [vmem:[#allocation7 + $0x1d0] sm:$0xff]  ;;  %v1037_v17 = vld [vmem:[#allocation7 + $0x148] sm:$0xff] }
  0x24   :  { %648 = vmatpush.bf16.msra.mxu2 %v1014_v22  ;;  %v75_v14 = vld [vmem:[#allocation5 + $0x30] sm:$0xff]  ;;  %v76_v15 = vld [vmem:[#allocation5 + $0x38] sm:$0xff]  ;;  %v1045_v20 = vld [vmem:[#allocation7 + $0x188] sm:$0xff] }
  0x25   :  { %661 = vmatpush.bf16.msra.mxu3 %v1022_v23  ;;  %v65_v21 = vld [vmem:[#allocation2 + $0x20] sm:$0xff]  ;;  %v66_v22 = vld [vmem:[#allocation2 + $0x28] sm:$0xff]  ;;  %v83_v23 = vmul.f32 0.0078125, %v75_v14  ;;  %v84_v24 = vmul.f32 0.0078125, %v76_v15  ;;  %v67_v26 = vld [vmem:[#allocation2 + $0x30] sm:$0xff] }
  0x26   :  { %623 = vmatpush.bf16.msra.mxu0 %v997_v28  ;;  %v1053_v25 = vld [vmem:[#allocation7 + $0x1c8] sm:$0xff]  ;;  %v68_v27 = vld [vmem:[#allocation2 + $0x38] sm:$0xff]  ;;  %v89_v28 = vadd.f32 %v81_v18, %v65_v21  ;;  %v1036_v31 = vld [vmem:[#allocation7 + $0x140] sm:$0xff] }
  0x27   :  { %636 = vmatpush.bf16.msra.mxu1 %v1005_v29  ;;  %v90_v29 = vadd.f32 %v82_v19, %v66_v22  ;;  %v91_v32 = vadd.f32 %v83_v23, %v67_v26  ;;  %v1044_v34 = vld [vmem:[#allocation7 + $0x180] sm:$0xff] }
  0x28   :  { %649 = vmatpush.bf16.msra.mxu2 %v1013_v30  ;;  %v1028_v30 = vld [vmem:[#allocation7 + $0x100] sm:$0xff]  ;;  %v97_v36 = vpack.c.bf16 %v89_v28, %v89_v28 }
  0x29   :  { %662 = vmatpush.bf16.msra.mxu3 %v1021_v33  ;;  %v92_v33 = vadd.f32 %v84_v24, %v68_v27  ;;  %v1052_v35 = vld [vmem:[#allocation7 + $0x1c0] sm:$0xff]  ;;  %v98_v37 = vpack.c.bf16 %v90_v29, %v90_v29  ;;  %v99_v38 = vpack.c.bf16 %v91_v32, %v91_v32 }
  0x2a   :  { %624 = vmatpush.bf16.msra.mxu0 %v996_v40  ;;  %v1066_v46 = vld [vmem:[%s1218_s3] ss:$0 sm:$0xff] }
  0x2b   :  { %637 = vmatpush.bf16.msra.mxu1 %v1004_v41  ;;  %v100_v39 = vpack.c.bf16 %v92_v33, %v92_v33 }
  0x2c   :  { %650 = vmatpush.bf16.msra.mxu2 %v1012_v44 }
  0x2d   :  { %663 = vmatpush.bf16.msra.mxu3 %v1020_v45  ;;  %625 = vmatmul.bf16.vlgmr.msra.gmra.mxu0 %v93_v54 }
  0x2e   :  { %669 = vmatpush.bf16.msrb.mxu0 %v1035_v48  ;;  %638 = vmatmul.bf16.vlgmr.msra.gmra.mxu1 %v94_v55 }
  0x2f   :  { %682 = vmatpush.bf16.msrb.mxu1 %v1043_v49  ;;  %651 = vmatmul.bf16.vlgmr.msra.gmra.mxu2 %v95_v52 }
  0x30   :  { %695 = vmatpush.bf16.msrb.mxu2 %v1051_v50  ;;  %664 = vmatmul.bf16.vlgmr.msra.gmra.mxu3 %v96_v53 }
  0x31   :  { %708 = vmatpush.bf16.msrb.mxu3 %v1059_v51 }
  0x32   :  { %670 = vmatpush.bf16.msrb.mxu0 %v1034_v56 }
  0x33   :  { %683 = vmatpush.bf16.msrb.mxu1 %v1042_v57 }
  0x34   :  { %696 = vmatpush.bf16.msrb.mxu2 %v1050_v58 }
  0x35   :  { %709 = vmatpush.bf16.msrb.mxu3 %v1058_v59 }
  0x36   :  { %671 = vmatpush.bf16.msrb.mxu0 %v1033_v60 }
  0x37   :  { %684 = vmatpush.bf16.msrb.mxu1 %v1041_v61 }
  0x38   :  { %697 = vmatpush.bf16.msrb.mxu2 %v1049_v62 }
  0x39   :  { %710 = vmatpush.bf16.msrb.mxu3 %v1057_v63 }
  0x3a   :  { %672 = vmatpush.bf16.msrb.mxu0 %v1032_v0 }
  0x3b   :  { %685 = vmatpush.bf16.msrb.mxu1 %v1040_v1 }
  0x3c   :  { %698 = vmatpush.bf16.msrb.mxu2 %v1048_v2 }
  0x3d   :  { %711 = vmatpush.bf16.msrb.mxu3 %v1056_v3 }
  0x3e   :  { %673 = vmatpush.bf16.msrb.mxu0 %v1031_v4 }
  0x3f   :  { %686 = vmatpush.bf16.msrb.mxu1 %v1039_v5 }
  0x40   :  { %699 = vmatpush.bf16.msrb.mxu2 %v1047_v6 }
  0x41   :  { %712 = vmatpush.bf16.msrb.mxu3 %v1055_v7 }
  0x42   :  { %674 = vmatpush.bf16.msrb.mxu0 %v1030_v8 }
  0x43   :  { %687 = vmatpush.bf16.msrb.mxu1 %v1038_v9 }
  0x44   :  { %700 = vmatpush.bf16.msrb.mxu2 %v1046_v10 }
  0x45   :  { %713 = vmatpush.bf16.msrb.mxu3 %v1054_v13 }
  0x46   :  { %675 = vmatpush.bf16.msrb.mxu0 %v1029_v16 }
  0x47   :  { %688 = vmatpush.bf16.msrb.mxu1 %v1037_v17 }
  0x48   :  { %701 = vmatpush.bf16.msrb.mxu2 %v1045_v20 }
  0x49   :  { %714 = vmatpush.bf16.msrb.mxu3 %v1053_v25 }
  0x4a   :  { %676 = vmatpush.bf16.msrb.mxu0 %v1028_v30 }
  0x4b   :  { %689 = vmatpush.bf16.msrb.mxu1 %v1036_v31 }
  0x4c   :  { %702 = vmatpush.bf16.msrb.mxu2 %v1044_v34 }
  0x4d   :  { %715 = vmatpush.bf16.msrb.mxu3 %v1052_v35  ;;  %677 = vmatmul.bf16.vlgmr.msrb.gmra.mxu0 %v97_v36 }
  0x4e   :  { %690 = vmatmul.bf16.vlgmr.msrb.gmra.mxu1 %v98_v37 }
  0x4f   :  { %703 = vmatmul.bf16.vlgmr.msrb.gmra.mxu2 %v99_v38 }
  0x50   :  { %716 = vmatmul.bf16.vlgmr.msrb.gmra.mxu3 %v100_v39 }
  0xaa   :  { %v626_v40 = vpop.f32.mrf.mxu0 }
  0xab   :  { %v639_v41 = vpop.f32.mrf.mxu1  ;;  %v627_v49 = vadd.f32 %v1066_v46, %v626_v40 }
  0xad   :  { %v640_v50 = vadd.f32 %v639_v41, %v627_v49 }
  0xb2   :  { %v652_v42 = vpop.f32.mrf.mxu2  ;;  %v628_v44 = vpop.f32.mrf.mxu0 }
  0xb3   :  { %v665_v43 = vpop.f32.mrf.mxu3  ;;  %v641_v45 = vpop.f32.mrf.mxu1  ;;  %v653_v51 = vadd.f32 %v652_v42, %v640_v50 }
  0xb5   :  { %v666_v52 = vadd.f32 %v665_v43, %v653_v51 }
  0xba   :  { %v654_v47 = vpop.f32.mrf.mxu2 }
  0xbb   :  { %v667_v48 = vpop.f32.mrf.mxu3 }
  0xca   :  { %v678_v53 = vpop.f32.mrf.mxu0 }
  0xcb   :  { %v691_v54 = vpop.f32.mrf.mxu1  ;;  %v679_v55 = vadd.f32 %v678_v53, %v666_v52 }
  0xcd   :  { %v692_v56 = vadd.f32 %v691_v54, %v679_v55 }
  0xd2   :  { %v704_v57 = vpop.f32.mrf.mxu2  ;;  %v680_v60 = vpop.f32.mrf.mxu0 }
  0xd3   :  { %v717_v58 = vpop.f32.mrf.mxu3  ;;  %v705_v59 = vadd.f32 %v704_v57, %v692_v56  ;;  %v693_v61 = vpop.f32.mrf.mxu1 }
  0xd5   :  { %v718_v62 = vadd.f32 %v717_v58, %v705_v59 }
  0xd7   :  { %721 = vst [vmem:[#allocation8] sm:$0xff] %v718_v62 }
  0xd8   :  { %732 = dma.vmem_to_hbm [thread:$0]  %s728_s6, 128, %s730_s9, [#allocation4]  }
  0xda   :  { %v706_v63 = vpop.f32.mrf.mxu2 }
  0xdb   :  { %v719_v0 = vpop.f32.mrf.mxu3 }
  0xdc   :  { %1167 = dma.done.wait [#allocation4], 128  }
  0xdd   :  { %1168 = vsyncadd [#allocation4], 4294967168 }
  0xde   :  { %737 = vsyncpa [#allocation3], 1 }
  0xdf   :  { %738 = vsyncpa [#allocation6], 1 }
  0xe0   :  { %739 = vsyncpa [#allocation4], 1 }

</bundles_post_ra>
